<compile_context>
chip_gen: v6e
topology: v6e:2x2x1
jax: 0.10.0
libtpu: 0.0.40
codegen_flags: <defaults>
</compile_context>

<pallas_src>
import functools

import jax
import jax.numpy as jnp
from jax.experimental import pallas as pl
from jax.experimental.pallas import tpu as pltpu


_VMEM_LIMIT_BYTES = 48 * 1024 * 1024      # scoped VMEM limit (< v7x 64 MiB/TC)
_BLOCK_VMEM_BUDGET = 28 * 1024 * 1024     # budget for double-buffered in+out blocks
_COMBINED_MAX_ND = 512                    # combined path only if N*D is small ...
_COMBINED_MAX_W_BYTES = 4 * 1024 * 1024   # ... and W_comb stays a few MiB in VMEM


def _round_up(x, m):
    return (x + m - 1) // m * m


# ----------------------------------------------------------------------------
# Kernels
# ----------------------------------------------------------------------------
def _combined_kernel(h_ref, w_ref, b_ref, o_ref, *, compute_dtype):
    # h_ref : (Bt, N*D)  input rows, original dtype (cast in-register below)
    # w_ref : (N*D, N*F) combined weight (absorbs the per-batch mean), resident
    # b_ref : (1, N*F)   bias tiled over particles, f32, resident
    # o_ref : (Bt, N*F)  lane-dense output slab
    x = h_ref[...].astype(compute_dtype)                 # free VPU cast (if any)
    acc = jnp.dot(x, w_ref[...], preferred_element_type=jnp.float32)
    # TODO(synk): `func` is a user-supplied callable in the PyTorch module;
    # tanh is hard-coded here (swap the activation below for other choices).
    o_ref[...] = jnp.tanh(acc + b_ref[...]).astype(o_ref.dtype)


def _split_kernel(h_ref, w_ref, b_ref, o_ref, *, compute_dtype):
    # Fallback for large N*D.
    # h_ref : (Bt, N, D)
    # w_ref : (2D, F)    fused weight: rows [0:D] act on h, rows [D:2D] on mean
    # b_ref : (1, F)     bias row, f32
    # o_ref : (Bt, N, F)
    Bt, N, D = h_ref.shape
    F = o_ref.shape[-1]
    h3 = h_ref[...]
    h2 = h3.reshape(Bt * N, D).astype(compute_dtype)
    means = jnp.mean(h3.astype(jnp.float32), axis=1)                 # (Bt, D) f32
    hh = jnp.dot(h2, w_ref[:D, :], preferred_element_type=jnp.float32)
    gg = jnp.dot(means.astype(compute_dtype), w_ref[D:, :],
                 preferred_element_type=jnp.float32)                 # (Bt, F)
    out = hh.reshape(Bt, N, F) + gg[:, None, :] + b_ref[...]
    o_ref[...] = jnp.tanh(out).astype(o_ref.dtype)


# ----------------------------------------------------------------------------
# Tiling heuristic
# ----------------------------------------------------------------------------
def _choose_batch_tile(B, N, per_batch_vmem_bytes, batch_tile, need_mult8,
                       allow_auto_split):
    if batch_tile is None:
        # ~1024 rows per grid step (measured ~85% of HBM roofline vs ~29% @128)
        Bt = max(1, min(B, pl.cdiv(1024, N)))
    else:
        Bt = max(1, min(int(batch_tile), B))
    cap = max(1, _BLOCK_VMEM_BUDGET // max(1, per_batch_vmem_bytes))
    Bt = min(Bt, cap)
    # v7x has 2 TensorCores: if everything fits one tile but each half still
    # carries >=512 rows, keep 2 tiles so the "parallel" axis spans both cores
    # (harmless on single-TC v5e/v6e).
    if allow_auto_split and Bt == B and (B // 2) * N >= 512:
        Bt = pl.cdiv(B, 2)
    if need_mult8 and Bt < B:
        # 2-D blocks: the sublane (second-to-last) dim must be a multiple of 8
        # unless it equals the full array dim.
        Bt = max(8, (Bt // 8) * 8)
        if Bt >= B:
            Bt = B
        elif B % Bt:
            # prefer a multiple-of-8 divisor of B -> skips the padding copy
            for d in range(Bt, 7, -8):
                if B % d == 0:
                    if 2 * d >= Bt:
                        Bt = d
                    break
    return Bt


# ----------------------------------------------------------------------------
# Wrapper
# ----------------------------------------------------------------------------
def intermediate_equivariant_layer(h, weight, bias_vec, *, batch_tile=None,
                                   compute_dtype=None, out_dtype=None,
                                   force_split=False):
    """h: (B, N, D); weight: (F, 2*D) [PyTorch nn.Linear layout]; bias_vec: (F,).

    batch_tile   : batches folded per grid step (default ~1024 rows per step,
                   VMEM-capped; may be adjusted for layout/divisibility).
    compute_dtype: dtype of the matmul inputs (e.g. jnp.bfloat16); the cast
                   happens in-register inside the kernel, accumulation / bias
                   add / tanh are always f32.
    out_dtype    : output dtype written directly by the kernel (default h.dtype).
    """
    B, N, D = h.shape
    F = weight.shape[0]
    assert weight.shape[1] == 2 * D

    compute_dtype = h.dtype if compute_dtype is None else compute_dtype
    out_dtype = h.dtype if out_dtype is None else out_dtype
    in_is = jnp.dtype(h.dtype).itemsize
    out_is = jnp.dtype(out_dtype).itemsize
    w_is = jnp.dtype(compute_dtype).itemsize

    use_combined = (not force_split and N * D <= _COMBINED_MAX_ND
                    and (N * D) * (N * F) * w_is <= _COMBINED_MAX_W_BYTES)

    compiler_params = pltpu.CompilerParams(
        dimension_semantics=("parallel",),
        vmem_limit_bytes=_VMEM_LIMIT_BYTES,
    )

    if use_combined:
        # ---- combined contraction: one (Bt, N*D) @ (N*D, N*F) per grid step
        lanes_in = _round_up(N * D, 128)
        lanes_out = _round_up(N * F, 128)
        per_b = 2 * (lanes_in * in_is + lanes_out * out_is)  # double-buffered
        Bt = _choose_batch_tile(B, N, per_b, batch_tile, need_mult8=True,
                                allow_auto_split=(batch_tile is None))
        num_tiles = pl.cdiv(B, Bt)
        Bp = num_tiles * Bt

        # W_comb[(n',d),(n,f)] = W_h[d,f]*[n==n'] + W_g[d,f]/N  (absorbs mean)
        w_h = jnp.transpose(weight[:, :D])                     # (D, F)
        w_g = jnp.transpose(weight[:, D:])                     # (D, F)
        eye = jnp.eye(N, dtype=weight.dtype)
        w_comb = (eye[:, None, :, None] * w_h[None, :, None, :]
                  + w_g[None, :, None, :] / N)
        w_comb = w_comb.reshape(N * D, N * F).astype(compute_dtype)
        b_comb = jnp.tile(bias_vec.astype(jnp.float32), N).reshape(1, N * F)

        h2 = h.reshape(B, N * D)                               # free reshape
        if Bp != B:                                            # rare: no divisor
            h2 = jnp.pad(h2, ((0, Bp - B), (0, 0)))

        kernel = functools.partial(_combined_kernel, compute_dtype=compute_dtype)
        out = pl.pallas_call(
            kernel,
            out_shape=jax.ShapeDtypeStruct((Bp, N * F), out_dtype),
            grid_spec=pl.GridSpec(
                grid=(num_tiles,),
                in_specs=[
                    pl.BlockSpec((Bt, N * D), lambda i: (i, 0)),       # h rows
                    pl.BlockSpec((N * D, N * F), lambda i: (0, 0)),    # W_comb
                    pl.BlockSpec((1, N * F), lambda i: (0, 0)),        # bias
                ],
                out_specs=pl.BlockSpec((Bt, N * F), lambda i: (i, 0)),
            ),
            compiler_params=compiler_params,
        )(h2, w_comb, b_comb)
        if Bp != B:
            out = out[:B]
        return out.reshape(B, N, F)

    # ---- fallback: split-weight path for large N*D ---------------------------
    per_b = 2 * _round_up(N, 8) * (_round_up(D, 128) * in_is
                                   + _round_up(F, 128) * out_is)
    Bt = _choose_batch_tile(B, N, per_b, batch_tile, need_mult8=False,
                            allow_auto_split=(batch_tile is None))
    num_tiles = pl.cdiv(B, Bt)
    Bp = num_tiles * Bt

    w_fused = jnp.transpose(weight).astype(compute_dtype)      # (2D, F)
    b2d = bias_vec.reshape(1, F).astype(jnp.float32)

    hc = h
    if Bp != B:
        hc = jnp.pad(hc, ((0, Bp - B), (0, 0), (0, 0)))

    kernel = functools.partial(_split_kernel, compute_dtype=compute_dtype)
    out = pl.pallas_call(
        kernel,
        out_shape=jax.ShapeDtypeStruct((Bp, N, F), out_dtype),
        grid_spec=pl.GridSpec(
            grid=(num_tiles,),
            in_specs=[
                pl.BlockSpec((Bt, N, D), lambda i: (i, 0, 0)),         # h
                pl.BlockSpec((2 * D, F), lambda i: (0, 0)),            # W fused
                pl.BlockSpec((1, F), lambda i: (0, 0)),                # bias
            ],
            out_specs=pl.BlockSpec((Bt, N, F), lambda i: (i, 0, 0)),
        ),
        compiler_params=compiler_params,
    )(hc, w_fused, b2d)
    if Bp != B:
        out = out[:B]
    return out


# ----------------------------------------------------------------------------
# Reference + tests
# ----------------------------------------------------------------------------
def _reference(h, weight, bias_vec):
    # Pure-JAX reference mirroring the PyTorch forward exactly.
    B, N, D = h.shape
    g = jnp.mean(h, axis=1, keepdims=True)
    g = jnp.broadcast_to(g, (B, N, D))
    f = jnp.concatenate([h, g], axis=2)                        # (B, N, 2D)
    lin = jnp.einsum("bnd,fd->bnf", f, weight) + bias_vec
    return jnp.tanh(lin)


if __name__ == "__main__":
    # Shapes consistent with the module:
    #   num_particles = 8, per-particle hidden D = 16 -> in_features = 32
    #   out_features = 32, batch = 2, func = tanh, bias = True
    B, N, D, F = 2, 8, 16, 32
    in_features = 2 * D

    key = jax.random.PRNGKey(0)
    k_h, k_w, k_b, k_h2, k_h3 = jax.random.split(key, 5)

    h = jax.random.normal(k_h, (B, N, D), dtype=jnp.float32)
    bound = 1.0 / jnp.sqrt(jnp.float32(in_features))
    weight = jax.random.uniform(k_w, (F, in_features), jnp.float32, -bound, bound)
    bias_vec = jax.random.uniform(k_b, (F,), jnp.float32, -bound, bound)

    ref = _reference(h, weight, bias_vec)

    # 1) default combined path, single tile (grid=(1,)), lane-dense output.
    out = jax.block_until_ready(intermediate_equivariant_layer(h, weight, bias_vec))
    assert out.shape == (B, N, F)
    assert jnp.allclose(out, ref, atol=2e-5, rtol=2e-5)

    # 2) multi-tile combined path: B=16, batch_tile=8 -> grid=(2,), no padding
    #    (exercises the "parallel" axis across both v7x TensorCores).
    B2 = 16
    h2 = jax.random.normal(k_h2, (B2, N, D), dtype=jnp.float32)
    out2 = jax.block_until_ready(
        intermediate_equivariant_layer(h2, weight, bias_vec, batch_tile=8))
    assert out2.shape == (B2, N, F)
    assert jnp.allclose(out2, _reference(h2, weight, bias_vec), atol=2e-5, rtol=2e-5)

    # 3) ragged batch (no divisor of 13 that is a multiple of 8): padded last
    #    tile, outputs sliced back to B.
    B3 = 13
    h3 = jax.random.normal(k_h3, (B3, N, D), dtype=jnp.float32)
    out3 = jax.block_until_ready(
        intermediate_equivariant_layer(h3, weight, bias_vec, batch_tile=8))
    assert out3.shape == (B3, N, F)
    assert jnp.allclose(out3, _reference(h3, weight, bias_vec), atol=2e-5, rtol=2e-5)

    # 4) bf16 matmul-input path: cast happens in-register in the kernel (h stays
    #    f32 in HBM); accumulation, bias add and tanh remain f32.
    out_bf16 = jax.block_until_ready(
        intermediate_equivariant_layer(h, weight, bias_vec,
                                       compute_dtype=jnp.bfloat16))
    assert out_bf16.shape == (B, N, F)
    assert jnp.allclose(out_bf16, ref, atol=5e-2, rtol=5e-2)

    # 5) fallback split-weight path (used when N*D is large), forced here to
    #    validate it on the small shapes.
    out_split = jax.block_until_ready(
        intermediate_equivariant_layer(h, weight, bias_vec, force_split=True))
    assert out_split.shape == (B, N, F)
    assert jnp.allclose(out_split, ref, atol=2e-5, rtol=2e-5)

    print("KERNEL_OK")
</pallas_src>

<mosaic_0001>
module attributes {stable_mosaic.version = 11 : i64} {
  func.func @_combined_kernel(%arg0: i32, %arg1: memref<2x128xf32, #tpu.memory_space<vmem>>, %arg2: memref<128x256xf32, #tpu.memory_space<vmem>>, %arg3: memref<1x256xf32, #tpu.memory_space<vmem>>, %arg4: memref<2x256xf32, #tpu.memory_space<vmem>>) attributes {dimension_semantics = [#tpu.dimension_semantics<parallel>], iteration_bounds = array<i64: 1>, scalar_prefetch = 0 : i64, scratch_operands = 0 : i64, tpu.core_type = #tpu.core_type<tc>, window_params = [{transform_indices = @transform_0, window_bounds = array<i64: 2, 128>}, {pipeline_mode = #tpu.pipeline_mode<synchronous>, transform_indices = @transform_1, window_bounds = array<i64: 128, 256>}, {pipeline_mode = #tpu.pipeline_mode<synchronous>, transform_indices = @transform_2, window_bounds = array<i64: 1, 256>}, {transform_indices = @transform_3, window_bounds = array<i64: 2, 256>}]} {
    %c0 = arith.constant 0 : index
    %c0_0 = arith.constant 0 : index
    %0 = vector.load %arg1[%c0, %c0_0] : memref<2x128xf32, #tpu.memory_space<vmem>>, vector<2x128xf32>
    %c0_1 = arith.constant 0 : index
    %c0_2 = arith.constant 0 : index
    %1 = vector.load %arg2[%c0_1, %c0_2] : memref<128x256xf32, #tpu.memory_space<vmem>>, vector<128x256xf32>
    %cst = arith.constant dense<0.000000e+00> : vector<2x256xf32>
    %2 = tpu.matmul %0, %1, %cst {dimension_numbers = #tpu.dot_dimension_numbers<[1], [0], [0], [1], [0, 0, 1, 1], [], []>} : vector<2x128xf32>, vector<128x256xf32>, vector<2x256xf32> -> vector<2x256xf32>
    %c0_3 = arith.constant 0 : index
    %c0_4 = arith.constant 0 : index
    %3 = vector.load %arg3[%c0_3, %c0_4] : memref<1x256xf32, #tpu.memory_space<vmem>>, vector<1x256xf32>
    %4 = vector.broadcast %3 : vector<1x256xf32> to vector<2x256xf32>
    %5 = arith.addf %2, %4 : vector<2x256xf32>
    %6 = math.tanh %5 : vector<2x256xf32>
    %c0_5 = arith.constant 0 : index
    %c0_6 = arith.constant 0 : index
    %7 = vector.load %arg4[%c0_5, %c0_6] : memref<2x256xf32, #tpu.memory_space<vmem>>, vector<2x256xf32>
    tpu.vector_store %arg4[%c0_5, %c0_6], %6 {strides = array<i32>} : memref<2x256xf32, #tpu.memory_space<vmem>>, vector<2x256xf32>,
    return
  }
  func.func @transform_0(%arg0: i32) -> (i32, i32) {
    %c0_i32 = arith.constant 0 : i32
    %c0_i32_0 = arith.constant 0 : i32
    return %arg0, %c0_i32 : i32, i32
  }
  func.func @transform_1(%arg0: i32) -> (i32, i32) {
    %c0_i32 = arith.constant 0 : i32
    %c0_i32_0 = arith.constant 0 : i32
    %c0_i32_1 = arith.constant 0 : i32
    return %c0_i32, %c0_i32_0 : i32, i32
  }
  func.func @transform_2(%arg0: i32) -> (i32, i32) {
    %c0_i32 = arith.constant 0 : i32
    %c0_i32_0 = arith.constant 0 : i32
    %c0_i32_1 = arith.constant 0 : i32
    return %c0_i32, %c0_i32_0 : i32, i32
  }
  func.func @transform_3(%arg0: i32) -> (i32, i32) {
    %c0_i32 = arith.constant 0 : i32
    %c0_i32_0 = arith.constant 0 : i32
    return %arg0, %c0_i32 : i32, i32
  }
}

</mosaic_0001>

<bundles_post_ra>
// kernel: tpu_custom_call.1
= control target key start
LH: loop header
LB: loop body
LE: loop exit
PB: predicated region body
PF: predicated region fallthrough
CT: control target
= control target key end

     0   :  { %8 = vsyncpa [#allocation3], 0  ;;  %s302_s0 = inlined_call_operand.hbm [shape: f32[2,128], index: 0, kind: input, shape index: {}]   ;;  %s303_s1 = inlined_call_operand.hbm [shape: f32[128,256], index: 1, kind: input, shape index: {}]   ;;  %s304_s2 = inlined_call_operand.vmem [shape: f32[1,256], index: 2, kind: input, shape index: {}]   ;;  %s305_s3 = inlined_call_operand.hbm [shape: f32[2,256], index: 3, kind: output, shape index: {}]  }
   0x1   :  { %9 = vsyncpa [#allocation6], 0 }
   0x2   :  { %10 = vsyncpa [#allocation4], 0  ;;  %s264_s12 = smov [#allocation2]   ;;  %s265_s14 = smov [#allocation5]  }
   0x3   :  { %s17_s13 = sshll.u32 %s264_s12, 4  ;;  %s26_s15 = sshll.u32 %s265_s14, 4  ;;  %s18_s13 = int_to_ptr.vmem [resolvable:$true] %s17_s13  ;;  %s27_s15 = int_to_ptr.vmem [resolvable:$true] %s26_s15 }
   0x4   :  { %s206_s16 = scalar_lea.vmem %s18_s13, 32  ;;  %p211_p1 = scmp.lt.s32.totalorder %s18_s13, %s18_s13 }
   0x5   :  { %p207_p0 = scmp.ne.s32.totalorder %s18_s13, %s206_s16  ;;  %p212_p2 = scmp.lt.s32.totalorder %s206_s16, %s206_s16 }
   0x7   :  { %p213_p3 = por %p212_p2, %p211_p1 }
   0x9   :  { %p214_p4 = pnand %p213_p3, %p207_p0 }
   0xb   :  { %217 = shalt.err (!%p214_p4)
}
   0xc   :  { %20 = dma.hbm_to_vmem [thread:$0]  %s302_s0, 32, %s18_s13, [#allocation3]  }
   0xd   :  { %s226_s19 = scalar_lea.vmem %s27_s15, 4096  ;;  %p231_p6 = scmp.lt.s32.totalorder %s27_s15, %s27_s15 }
   0xe   :  { %p227_p5 = scmp.ne.s32.totalorder %s27_s15, %s226_s19  ;;  %p232_p7 = scmp.lt.s32.totalorder %s226_s19, %s226_s19 }
  0x10   :  { %p233_p8 = por %p232_p7, %p231_p6 }
  0x12   :  { %p234_p9 = pnand %p233_p8, %p227_p5 }
  0x14   :  { %237 = shalt.err (!%p234_p9)
}
  0x15   :  { %s266_s20 = smov 256   ;;  %s267_s21 = smov 16  }
  0x16   :  { %32 = dma.hbm_to_vmem [thread:$0]  %s303_s1, 4096, %s27_s15, [#allocation6], %s266_s20, %s266_s20, %s267_s21  }
  0x17   :  { %258 = dma.done.wait [#allocation3], 32  }
  0x18   :  { %259 = vsyncadd [#allocation3], 4294967264 }
  0x19   :  { %260 = dma.done.wait [#allocation6], 4096  }
  0x1a   :  { %261 = vsyncadd [#allocation6], 4294963200  ;;  %v268_v0 = vmov 0.0   ;;  %v73_v1 = vld [vmem:[#allocation5 + $0xf8] sm:$0xff]  ;;  %v72_v2 = vld [vmem:[#allocation5 + $0xf0] sm:$0xff]  ;;  %v76_v34 = vlaneseq  ;;  %s269_s24 = smov [#allocation7]  }
  0x1b   :  { %150 = vmatprep.mubr.f32.mxu0 %v268_v0  ;;  %v71_v3 = vld [vmem:[#allocation5 + $0xe8] sm:$0xff]  ;;  %86 = vmatprep.subr.mxu0 %v73_v1  ;;  %v70_v4 = vld [vmem:[#allocation5 + $0xe0] sm:$0xff]  ;;  %v69_v5 = vld [vmem:[#allocation5 + $0xd8] sm:$0xff]  ;;  %s177_s25 = sshll.u32 %s269_s24, 4  ;;  %s178_s25 = int_to_ptr.vmem [resolvable:$true] %s177_s25 }
  0x1c   :  { %87 = vmatpush1.msra.mxu0 %v72_v2  ;;  %v68_v6 = vld [vmem:[#allocation5 + $0xd0] sm:$0xff]  ;;  %v67_v7 = vld [vmem:[#allocation5 + $0xc8] sm:$0xff]  ;;  %v66_v8 = vld [vmem:[#allocation5 + $0xc0] sm:$0xff]  ;;  %v77_v35 = vshrl.u32 %v76_v34, 7  ;;  %s238_s26 = scalar_lea.vmem %s178_s25, 64  ;;  %p243_p11 = scmp.lt.s32.totalorder %s178_s25, %s178_s25 }
  0x1d   :  { %88 = vmatprep.subr.mxu0 %v71_v3  ;;  %v65_v9 = vld [vmem:[#allocation5 + $0xb8] sm:$0xff]  ;;  %v64_v10 = vld [vmem:[#allocation5 + $0xb0] sm:$0xff]  ;;  %v63_v11 = vld [vmem:[#allocation5 + $0xa8] sm:$0xff]  ;;  %p239_p10 = scmp.ne.s32.totalorder %s178_s25, %s238_s26  ;;  %p244_p12 = scmp.lt.s32.totalorder %s238_s26, %s238_s26 }
  0x1e   :  { %89 = vmatpush1.msra.mxu0 %v70_v4  ;;  %v62_v12 = vld [vmem:[#allocation5 + $0xa0] sm:$0xff]  ;;  %v61_v13 = vld [vmem:[#allocation5 + $0x98] sm:$0xff]  ;;  %v60_v14 = vld [vmem:[#allocation5 + $0x90] sm:$0xff]  ;;  %v78_v36 = vsub.s32 0, %v77_v35  ;;  %v82_v38 = vsub.s32 1, %v77_v35 }
  0x1f   :  { %90 = vmatprep.subr.mxu0 %v69_v5  ;;  %v59_v15 = vld [vmem:[#allocation5 + $0x88] sm:$0xff]  ;;  %v58_v16 = vld [vmem:[#allocation5 + $0x80] sm:$0xff]  ;;  %v57_v17 = vld [vmem:[#allocation5 + $0x78] sm:$0xff]  ;;  %p245_p13 = por %p244_p12, %p243_p11 }
  0x20   :  { %91 = vmatpush1.msra.mxu0 %v68_v6  ;;  %v56_v18 = vld [vmem:[#allocation5 + $0x70] sm:$0xff]  ;;  %v55_v19 = vld [vmem:[#allocation5 + $0x68] sm:$0xff]  ;;  %v54_v20 = vld [vmem:[#allocation5 + $0x60] sm:$0xff] }
  0x21   :  { %92 = vmatprep.subr.mxu0 %v67_v7  ;;  %v53_v21 = vld [vmem:[#allocation5 + $0x58] sm:$0xff]  ;;  %v52_v22 = vld [vmem:[#allocation5 + $0x50] sm:$0xff]  ;;  %v51_v23 = vld [vmem:[#allocation5 + $0x48] sm:$0xff]  ;;  %p246_p0 = pnand %p245_p13, %p239_p10 }
  0x22   :  { %93 = vmatpush1.msra.mxu0 %v66_v8  ;;  %v50_v24 = vld [vmem:[#allocation5 + $0x40] sm:$0xff]  ;;  %v49_v25 = vld [vmem:[#allocation5 + $0x38] sm:$0xff]  ;;  %v48_v26 = vld [vmem:[#allocation5 + $0x30] sm:$0xff] }
  0x23   :  { %94 = vmatprep.subr.mxu0 %v65_v9  ;;  %v47_v27 = vld [vmem:[#allocation5 + $0x28] sm:$0xff]  ;;  %v46_v28 = vld [vmem:[#allocation5 + $0x20] sm:$0xff]  ;;  %v45_v29 = vld [vmem:[#allocation5 + $0x18] sm:$0xff] }
  0x24   :  { %95 = vmatpush1.msra.mxu0 %v64_v10  ;;  %v44_v30 = vld [vmem:[#allocation5 + $0x10] sm:$0xff]  ;;  %v43_v31 = vld [vmem:[#allocation5 + $0x8] sm:$0xff]  ;;  %v42_v32 = vld [vmem:[#allocation5] sm:$0xff] }
  0x25   :  { %96 = vmatprep.subr.mxu0 %v63_v11  ;;  %v41_v33 = vld [vmem:[#allocation2] sm:$0x3] }
  0x26   :  { %97 = vmatpush1.msra.mxu0 %v62_v12  ;;  %v74_v37 = vld [vmem:[%s304_s2] sm:$0x3] }
  0x27   :  { %98 = vmatprep.subr.mxu0 %v61_v13  ;;  %v79_v39 = vrot.slane %v74_v37, %v78_v36  ;;  %v83_v40 = vrot.slane %v74_v37, %v82_v38 }
  0x28   :  { %99 = vmatpush1.msra.mxu0 %v60_v14 }
  0x29   :  { %100 = vmatprep.subr.mxu0 %v59_v15 }
  0x2a   :  { %101 = vmatpush1.msra.mxu0 %v58_v16 }
  0x2b   :  { %102 = vmatprep.subr.mxu0 %v57_v17 }
  0x2c   :  { %103 = vmatpush1.msra.mxu0 %v56_v18 }
  0x2d   :  { %104 = vmatprep.subr.mxu0 %v55_v19 }
  0x2e   :  { %105 = vmatpush1.msra.mxu0 %v54_v20 }
  0x2f   :  { %106 = vmatprep.subr.mxu0 %v53_v21 }
  0x30   :  { %107 = vmatpush1.msra.mxu0 %v52_v22 }
  0x31   :  { %108 = vmatprep.subr.mxu0 %v51_v23 }
  0x32   :  { %109 = vmatpush1.msra.mxu0 %v50_v24 }
  0x33   :  { %110 = vmatprep.subr.mxu0 %v49_v25 }
  0x34   :  { %111 = vmatpush1.msra.mxu0 %v48_v26 }
  0x35   :  { %112 = vmatprep.subr.mxu0 %v47_v27 }
  0x36   :  { %113 = vmatpush1.msra.mxu0 %v46_v28 }
  0x37   :  { %114 = vmatprep.subr.mxu0 %v45_v29 }
  0x38   :  { %115 = vmatpush1.msra.mxu0 %v44_v30 }
  0x39   :  { %116 = vmatprep.subr.mxu0 %v43_v31 }
  0x3a   :  { %117 = vmatpush1.msra.mxu0 %v42_v32 }
  0x3b   :  { %151 = vmatmul.mubr.f32.vlgmr.msra.gmra.mxu0 %v41_v33 }
  0xfb   :  { %v152_v41 = vpop.f32.mrf.mxu0 }
  0xfc   :  { %v153_v42 = vadd.f32 %v152_v41, %v79_v39 }
  0xfd   :  { %v154_v43 = vpop.f32.mrf.mxu0 }
  0xfe   :  { %v155_v44 = vadd.f32 %v154_v43, %v83_v40  ;;  %194 = vtanh.f32 %v153_v42 }
 0x100   :  { %196 = vtanh.f32 %v155_v44 }
 0x10b   :  { %v195_v45 = vpop.eup %194 }
 0x10d   :  { %v197_v46 = vpop.eup %196 }
 0x10e   :  { %v161_v47 = vcombine.low %v195_v45, %v197_v46 }
 0x110   :  { %187 = vst.sshfl [vmem:[#allocation7] sm:$0x33 pattern:$0x76325410] %v161_v47 }
 0x111   :  { %249 = shalt.err (!%p246_p0)
}
 0x112   :  { %180 = dma.vmem_to_hbm [thread:$0]  %s178_s25, 64, %s305_s3, [#allocation4]  }
 0x113   :  { %262 = dma.done.wait [#allocation4], 64  }
 0x114   :  { %263 = vsyncadd [#allocation4], 4294967232 }
 0x115   :  { %184 = vsyncpa [#allocation3], 1 }
 0x116   :  { %185 = vsyncpa [#allocation6], 1 }
 0x117   :  { %186 = vsyncpa [#allocation4], 1 }

</bundles_post_ra>
